<compile_context>
chip_gen: v7x
topology: tpu7x:2x2x1
jax: 0.10.0
libtpu: 0.0.40
codegen_flags: <defaults>
</compile_context>

<pallas_src>
import jax
import jax.numpy as jnp
from jax.experimental import pallas as pl
from jax.experimental.pallas import tpu as pltpu


def _round_up(x, m):
    return (x + m - 1) // m * m


def mlp_predictor(feats, w1, b1, gamma, beta, w2, b2, *,
                  block_rows=128, eps=1e-5):
    """feats: (N, in_feats) f32.
    Parameters use PyTorch layouts: w1 (hidden, in_feats), b1 (hidden,),
    gamma/beta (hidden,), w2 (n_tasks, hidden), b2 (n_tasks,)."""
    n, in_feats = feats.shape
    hidden = w1.shape[0]
    n_tasks = w2.shape[0]
    assert block_rows % 8 == 0

    # ---- tiny per-call parameter preprocessing (XLA side) -----------------
    w1_t = w1.T                                    # (in_feats, hidden)
    w2_t = w2.T                                    # (hidden, n_tasks)
    # Fold BatchNorm affine into the second Linear (done in f32).
    w2_fold = gamma[:, None] * w2_t                # (hidden, n_tasks)
    b2_fold = beta[None, :] @ w2_t + b2[None, :]   # (1, n_tasks)

    # ---- pad lane dims to 128, batch to a tile multiple --------------------
    kp = _round_up(in_feats, 128)
    hp = _round_up(hidden, 128)
    tp = _round_up(n_tasks, 128)
    tn = block_rows
    nb = pl.cdiv(n, tn)
    np_rows = nb * tn

    xp = jnp.zeros((np_rows, kp), jnp.float32).at[:n, :in_feats].set(feats)
    w1p = jnp.zeros((kp, hp), jnp.float32).at[:in_feats, :hidden].set(w1_t)
    b1p = jnp.zeros((1, hp), jnp.float32).at[:, :hidden].set(b1[None, :])
    w2p = jnp.zeros((hp, tp), jnp.float32).at[:hidden, :n_tasks].set(w2_fold)
    b2p = jnp.zeros((1, tp), jnp.float32).at[:, :n_tasks].set(b2_fold)

    # bf16 MXU operands; accumulation / BN math stay f32.
    xp = xp.astype(jnp.bfloat16)
    w1p = w1p.astype(jnp.bfloat16)
    w2p = w2p.astype(jnp.bfloat16)

    inv_n = 1.0 / n

    def kernel(x_ref, w1_ref, b1_ref, w2f_ref, b2f_ref, o_ref,
               sum_sc, sumsq_sc):
        phase = pl.program_id(0)
        i = pl.program_id(1)

        # Dropout(p=0.0) == identity.
        # Linear 1 (MXU, bf16 in / f32 acc) + ReLU (VPU).  Recomputed in both
        # phases: cheaper than an (N, hidden) f32 HBM round trip.
        h = jnp.dot(x_ref[...], w1_ref[...], preferred_element_type=jnp.float32)
        h = jnp.maximum(h + b1_ref[...], 0.0)

        # Phase 0: accumulate full-batch per-feature sum / sum-of-squares.
        @pl.when(phase == 0)
        def _accumulate_stats():
            @pl.when(i == 0)
            def _init():
                sum_sc[...] = jnp.zeros_like(sum_sc)
                sumsq_sc[...] = jnp.zeros_like(sumsq_sc)

            # Mask rows beyond the true batch size (batch padding rows would
            # otherwise pollute the statistics: relu(b1) != 0).
            rows = i * tn + jax.lax.broadcasted_iota(jnp.int32, h.shape, 0)
            hm = jnp.where(rows < n, h, 0.0)
            sum_sc[...] += jnp.sum(hm, axis=0, keepdims=True)
            sumsq_sc[...] += jnp.sum(hm * hm, axis=0, keepdims=True)

        # Phase 1: normalize with full-batch stats, project (gamma/beta folded
        # into w2f/b2f), and write the lane-dense output tile.
        @pl.when(phase == 1)
        def _normalize_and_project():
            mean = sum_sc[...] * inv_n
            var = jnp.maximum(sumsq_sc[...] * inv_n - mean * mean, 0.0)
            h_hat = (h - mean) * jax.lax.rsqrt(var + eps)
            y = jnp.dot(h_hat.astype(w2f_ref.dtype), w2f_ref[...],
                        preferred_element_type=jnp.float32)
            o_ref[...] = y + b2f_ref[...]

    flops = 2 * np_rows * kp * hp * 2 + 2 * np_rows * hp * tp
    bytes_accessed = (2 * np_rows * kp * 2        # x read in both phases (bf16)
                      + kp * hp * 2 + hp * tp * 2  # weights (bf16)
                      + (hp + tp) * 4              # biases (f32)
                      + np_rows * tp * 4)          # output (f32)

    out = pl.pallas_call(
        kernel,
        out_shape=jax.ShapeDtypeStruct((np_rows, tp), jnp.float32),
        grid=(2, nb),
        in_specs=[
            pl.BlockSpec((tn, kp), lambda p, i: (i, 0)),   # x tile (batch-tiled)
            pl.BlockSpec((kp, hp), lambda p, i: (0, 0)),   # w1   (VMEM-resident)
            pl.BlockSpec((1, hp), lambda p, i: (0, 0)),    # b1
            pl.BlockSpec((hp, tp), lambda p, i: (0, 0)),   # w2 (gamma-folded)
            pl.BlockSpec((1, tp), lambda p, i: (0, 0)),    # fused bias
        ],
        # Phase 0 never writes the output; keep it parked on block 0 so no
        # garbage ever hits HBM. Phase 1 writes block i.
        out_specs=pl.BlockSpec((tn, tp), lambda p, i: (p * i, 0)),
        scratch_shapes=[pltpu.VMEM((1, hp), jnp.float32),   # sum
                        pltpu.VMEM((1, hp), jnp.float32)],  # sum of squares
        # Both axes "arbitrary": the batch axis carries the cross-tile stats
        # accumulation and the phase axis is sequential.  (A 2-call split could
        # mark the normalize/project pass "parallel" for v7x's 2 TensorCores.)
        compiler_params=pltpu.CompilerParams(
            dimension_semantics=("arbitrary", "arbitrary")),
        cost_estimate=pl.CostEstimate(flops=flops, transcendentals=nb * hp,
                                      bytes_accessed=bytes_accessed),
    )(xp, w1p, b1p, w2p, b2p)

    return out[:n, :n_tasks]


def mlp_predictor_matched_ref(feats, w1, b1, gamma, beta, w2, b2, eps=1e-5):
    """Reference mirroring the kernel's dtype handling (bf16 matmul operands,
    f32 accumulation, uncentered variance, folded affine)."""
    n = feats.shape[0]
    w1_t, w2_t = w1.T, w2.T
    h = jnp.dot(feats.astype(jnp.bfloat16), w1_t.astype(jnp.bfloat16),
                preferred_element_type=jnp.float32)
    h = jnp.maximum(h + b1[None, :], 0.0)
    mean = jnp.sum(h, axis=0, keepdims=True) / n
    var = jnp.maximum(jnp.sum(h * h, axis=0, keepdims=True) / n - mean * mean, 0.0)
    h_hat = (h - mean) * jax.lax.rsqrt(var + eps)
    w2f = (gamma[:, None] * w2_t).astype(jnp.bfloat16)
    b2f = beta[None, :] @ w2_t + b2[None, :]
    return jnp.dot(h_hat.astype(jnp.bfloat16), w2f,
                   preferred_element_type=jnp.float32) + b2f


def mlp_predictor_ref(feats, w1, b1, gamma, beta, w2, b2, eps=1e-5):
    """Pure-f32 reference matching the PyTorch module exactly."""
    h = jnp.maximum(feats @ w1.T + b1[None, :], 0.0)
    mean = jnp.mean(h, axis=0, keepdims=True)
    var = jnp.mean((h - mean) ** 2, axis=0, keepdims=True)
    h = (h - mean) / jnp.sqrt(var + eps) * gamma[None, :] + beta[None, :]
    return h @ w2.T + b2[None, :]


if __name__ == "__main__":
    # Small shapes consistent with the module: feats (batch, in_feats).
    # batch=200 is intentionally NOT a multiple of the 128-row tile so the
    # masked statistics path is exercised.
    batch, in_feats, hidden_feats, n_tasks = 200, 32, 64, 8

    key = jax.random.PRNGKey(0)
    k_x, k_w1, k_b1, k_g, k_bt, k_w2, k_b2 = jax.random.split(key, 7)

    feats = jax.random.normal(k_x, (batch, in_feats), jnp.float32)
    # PyTorch layouts: Linear weight (out_features, in_features), 1-D biases.
    w1 = jax.random.normal(k_w1, (hidden_feats, in_feats), jnp.float32) * 0.1
    b1 = jax.random.normal(k_b1, (hidden_feats,), jnp.float32) * 0.1
    gamma = 1.0 + 0.1 * jax.random.normal(k_g, (hidden_feats,), jnp.float32)
    beta = 0.1 * jax.random.normal(k_bt, (hidden_feats,), jnp.float32)
    w2 = jax.random.normal(k_w2, (n_tasks, hidden_feats), jnp.float32) * 0.1
    b2 = jax.random.normal(k_b2, (n_tasks,), jnp.float32) * 0.1

    out = jax.block_until_ready(
        mlp_predictor(feats, w1, b1, gamma, beta, w2, b2))
    assert out.shape == (batch, n_tasks)

    # Strict check against a reference that mirrors the kernel's arithmetic.
    ref_matched = mlp_predictor_matched_ref(feats, w1, b1, gamma, beta, w2, b2)
    assert jnp.allclose(out, ref_matched, atol=1e-3, rtol=1e-3), \
        "mismatch vs dtype-matched reference"

    # Module-fidelity check: only bf16 matmul-operand rounding separates the
    # kernel from the pure-f32 PyTorch semantics.
    ref_f32 = mlp_predictor_ref(feats, w1, b1, gamma, beta, w2, b2)
    max_err = float(jnp.max(jnp.abs(out - ref_f32)))
    assert max_err < 1e-1, f"too far from f32 module semantics: {max_err}"

    print("KERNEL_OK")
</pallas_src>

<mosaic_0001>
module attributes {stable_mosaic.version = 11 : i64} {
  func.func @kernel(%arg0: i32, %arg1: i32, %arg2: memref<128x128xbf16, #tpu.memory_space<vmem>>, %arg3: memref<128x128xbf16, #tpu.memory_space<vmem>>, %arg4: memref<1x128xf32, #tpu.memory_space<vmem>>, %arg5: memref<128x128xbf16, #tpu.memory_space<vmem>>, %arg6: memref<1x128xf32, #tpu.memory_space<vmem>>, %arg7: memref<128x128xf32, #tpu.memory_space<vmem>>, %arg8: memref<1x128xf32, #tpu.memory_space<vmem>>, %arg9: memref<1x128xf32, #tpu.memory_space<vmem>>) attributes {dimension_semantics = [#tpu.dimension_semantics<arbitrary>, #tpu.dimension_semantics<arbitrary>], iteration_bounds = array<i64: 2, 2>, scalar_prefetch = 0 : i64, scratch_operands = 2 : i64, tpu.core_type = #tpu.core_type<tc>, window_params = [{transform_indices = @transform_0, window_bounds = array<i64: 128, 128>}, {pipeline_mode = #tpu.pipeline_mode<synchronous>, transform_indices = @transform_1, window_bounds = array<i64: 128, 128>}, {pipeline_mode = #tpu.pipeline_mode<synchronous>, transform_indices = @transform_2, window_bounds = array<i64: 1, 128>}, {pipeline_mode = #tpu.pipeline_mode<synchronous>, transform_indices = @transform_3, window_bounds = array<i64: 128, 128>}, {pipeline_mode = #tpu.pipeline_mode<synchronous>, transform_indices = @transform_4, window_bounds = array<i64: 1, 128>}, {transform_indices = @transform_5, window_bounds = array<i64: 128, 128>}]} {
    %c0 = arith.constant 0 : index
    %c0_0 = arith.constant 0 : index
    %0 = vector.load %arg2[%c0, %c0_0] : memref<128x128xbf16, #tpu.memory_space<vmem>>, vector<128x128xbf16>
    %c0_1 = arith.constant 0 : index
    %c0_2 = arith.constant 0 : index
    %1 = vector.load %arg3[%c0_1, %c0_2] : memref<128x128xbf16, #tpu.memory_space<vmem>>, vector<128x128xbf16>
    %cst = arith.constant dense<0.000000e+00> : vector<128x128xf32>
    %2 = tpu.matmul %0, %1, %cst {dimension_numbers = #tpu.dot_dimension_numbers<[1], [0], [0], [1], [0, 0, 1, 1], [], []>} : vector<128x128xbf16>, vector<128x128xbf16>, vector<128x128xf32> -> vector<128x128xf32>
    %c0_3 = arith.constant 0 : index
    %c0_4 = arith.constant 0 : index
    %3 = vector.load %arg4[%c0_3, %c0_4] : memref<1x128xf32, #tpu.memory_space<vmem>>, vector<1x128xf32>
    %4 = vector.broadcast %3 : vector<1x128xf32> to vector<128x128xf32>
    %5 = arith.addf %2, %4 : vector<128x128xf32>
    %cst_5 = arith.constant 0.000000e+00 : f32
    %6 = vector.broadcast %cst_5 : f32 to vector<128x128xf32>
    %7 = arith.maximumf %5, %6 : vector<128x128xf32>
    %c0_i32 = arith.constant 0 : i32
    %8 = arith.cmpi eq, %arg0, %c0_i32 : i32
    %9 = arith.extui %8 : i1 to i32
    %c0_i32_6 = arith.constant 0 : i32
    %10 = arith.cmpi ne, %9, %c0_i32_6 : i32
    scf.if %10 {
      %c0_i32_8 = arith.constant 0 : i32
      %14 = arith.cmpi eq, %arg1, %c0_i32_8 : i32
      %15 = arith.extui %14 : i1 to i32
      %c0_i32_9 = arith.constant 0 : i32
      %16 = arith.cmpi ne, %15, %c0_i32_9 : i32
      scf.if %16 {
        %cst_21 = arith.constant 0.000000e+00 : f32
        %36 = vector.broadcast %cst_21 : f32 to vector<1x128xf32>
        %c0_22 = arith.constant 0 : index
        %c0_23 = arith.constant 0 : index
        %37 = vector.load %arg8[%c0_22, %c0_23] : memref<1x128xf32, #tpu.memory_space<vmem>>, vector<1x128xf32>
        tpu.vector_store %arg8[%c0_22, %c0_23], %36 {strides = array<i32>} : memref<1x128xf32, #tpu.memory_space<vmem>>, vector<1x128xf32>,
        %cst_24 = arith.constant 0.000000e+00 : f32
        %38 = vector.broadcast %cst_24 : f32 to vector<1x128xf32>
        %c0_25 = arith.constant 0 : index
        %c0_26 = arith.constant 0 : index
        %39 = vector.load %arg9[%c0_25, %c0_26] : memref<1x128xf32, #tpu.memory_space<vmem>>, vector<1x128xf32>
        tpu.vector_store %arg9[%c0_25, %c0_26], %38 {strides = array<i32>} : memref<1x128xf32, #tpu.memory_space<vmem>>, vector<1x128xf32>,
      } else {
      }
      %c128_i32 = arith.constant 128 : i32
      %17 = arith.muli %arg1, %c128_i32 : i32
      %18 = tpu.iota {dimensions = array<i32: 0>} : vector<128x128xi32>
      %19 = vector.broadcast %17 : i32 to vector<128x128xi32>
      %20 = arith.addi %19, %18 : vector<128x128xi32>
      %c200_i32 = arith.constant 200 : i32
      %21 = vector.broadcast %c200_i32 : i32 to vector<128x128xi32>
      %22 = arith.cmpi slt, %20, %21 : vector<128x128xi32>
      %cst_10 = arith.constant 0.000000e+00 : f32
      %23 = vector.broadcast %cst_10 : f32 to vector<128x128xf32>
      %24 = arith.select %22, %7, %23 : vector<128x128xi1>, vector<128x128xf32>
      %c0_11 = arith.constant 0 : index
      %c0_12 = arith.constant 0 : index
      %25 = vector.load %arg8[%c0_11, %c0_12] : memref<1x128xf32, #tpu.memory_space<vmem>>, vector<1x128xf32>
      %cst_13 = arith.constant dense<0.000000e+00> : vector<128xf32>
      %26 = vector.multi_reduction <add>, %24, %cst_13 [0] : vector<128x128xf32> to vector<128xf32>
      %27 = vector.shape_cast %26 : vector<128xf32> to vector<1x128xf32>
      %28 = arith.addf %25, %27 : vector<1x128xf32>
      %c0_14 = arith.constant 0 : index
      %c0_15 = arith.constant 0 : index
      %29 = vector.load %arg8[%c0_14, %c0_15] : memref<1x128xf32, #tpu.memory_space<vmem>>, vector<1x128xf32>
      tpu.vector_store %arg8[%c0_14, %c0_15], %28 {strides = array<i32>} : memref<1x128xf32, #tpu.memory_space<vmem>>, vector<1x128xf32>,
      %c0_16 = arith.constant 0 : index
      %c0_17 = arith.constant 0 : index
      %30 = vector.load %arg9[%c0_16, %c0_17] : memref<1x128xf32, #tpu.memory_space<vmem>>, vector<1x128xf32>
      %31 = arith.mulf %24, %24 : vector<128x128xf32>
      %cst_18 = arith.constant dense<0.000000e+00> : vector<128xf32>
      %32 = vector.multi_reduction <add>, %31, %cst_18 [0] : vector<128x128xf32> to vector<128xf32>
      %33 = vector.shape_cast %32 : vector<128xf32> to vector<1x128xf32>
      %34 = arith.addf %30, %33 : vector<1x128xf32>
      %c0_19 = arith.constant 0 : index
      %c0_20 = arith.constant 0 : index
      %35 = vector.load %arg9[%c0_19, %c0_20] : memref<1x128xf32, #tpu.memory_space<vmem>>, vector<1x128xf32>
      tpu.vector_store %arg9[%c0_19, %c0_20], %34 {strides = array<i32>} : memref<1x128xf32, #tpu.memory_space<vmem>>, vector<1x128xf32>,
    } else {
    }
    %c1_i32 = arith.constant 1 : i32
    %11 = arith.cmpi eq, %arg0, %c1_i32 : i32
    %12 = arith.extui %11 : i1 to i32
    %c0_i32_7 = arith.constant 0 : i32
    %13 = arith.cmpi ne, %12, %c0_i32_7 : i32
    scf.if %13 {
      %c0_8 = arith.constant 0 : index
      %c0_9 = arith.constant 0 : index
      %14 = vector.load %arg8[%c0_8, %c0_9] : memref<1x128xf32, #tpu.memory_space<vmem>>, vector<1x128xf32>
      %cst_10 = arith.constant 5.000000e-03 : f32
      %15 = vector.broadcast %cst_10 : f32 to vector<1x128xf32>
      %16 = arith.mulf %14, %15 : vector<1x128xf32>
      %c0_11 = arith.constant 0 : index
      %c0_12 = arith.constant 0 : index
      %17 = vector.load %arg9[%c0_11, %c0_12] : memref<1x128xf32, #tpu.memory_space<vmem>>, vector<1x128xf32>
      %cst_13 = arith.constant 5.000000e-03 : f32
      %18 = vector.broadcast %cst_13 : f32 to vector<1x128xf32>
      %19 = arith.mulf %17, %18 : vector<1x128xf32>
      %20 = arith.mulf %16, %16 : vector<1x128xf32>
      %21 = arith.subf %19, %20 : vector<1x128xf32>
      %cst_14 = arith.constant 0.000000e+00 : f32
      %22 = vector.broadcast %cst_14 : f32 to vector<1x128xf32>
      %23 = arith.maximumf %21, %22 : vector<1x128xf32>
      %24 = vector.broadcast %16 : vector<1x128xf32> to vector<128x128xf32>
      %25 = arith.subf %7, %24 : vector<128x128xf32>
      %cst_15 = arith.constant 9.99999974E-6 : f32
      %26 = vector.broadcast %cst_15 : f32 to vector<1x128xf32>
      %27 = arith.addf %23, %26 : vector<1x128xf32>
      %28 = math.rsqrt %27 : vector<1x128xf32>
      %29 = vector.broadcast %28 : vector<1x128xf32> to vector<128x128xf32>
      %30 = arith.mulf %25, %29 : vector<128x128xf32>
      %31 = arith.truncf %30 : vector<128x128xf32> to vector<128x128xbf16>
      %c0_16 = arith.constant 0 : index
      %c0_17 = arith.constant 0 : index
      %32 = vector.load %arg5[%c0_16, %c0_17] : memref<128x128xbf16, #tpu.memory_space<vmem>>, vector<128x128xbf16>
      %cst_18 = arith.constant dense<0.000000e+00> : vector<128x128xf32>
      %33 = tpu.matmul %31, %32, %cst_18 {dimension_numbers = #tpu.dot_dimension_numbers<[1], [0], [0], [1], [0, 0, 1, 1], [], []>} : vector<128x128xbf16>, vector<128x128xbf16>, vector<128x128xf32> -> vector<128x128xf32>
      %c0_19 = arith.constant 0 : index
      %c0_20 = arith.constant 0 : index
      %34 = vector.load %arg6[%c0_19, %c0_20] : memref<1x128xf32, #tpu.memory_space<vmem>>, vector<1x128xf32>
      %35 = vector.broadcast %34 : vector<1x128xf32> to vector<128x128xf32>
      %36 = arith.addf %33, %35 : vector<128x128xf32>
      %c0_21 = arith.constant 0 : index
      %c0_22 = arith.constant 0 : index
      %37 = vector.load %arg7[%c0_21, %c0_22] : memref<128x128xf32, #tpu.memory_space<vmem>>, vector<128x128xf32>
      tpu.vector_store %arg7[%c0_21, %c0_22], %36 {strides = array<i32>} : memref<128x128xf32, #tpu.memory_space<vmem>>, vector<128x128xf32>,
    } else {
    }
    return
  }
  func.func @transform_0(%arg0: i32, %arg1: i32) -> (i32, i32) {
    %c0_i32 = arith.constant 0 : i32
    %c0_i32_0 = arith.constant 0 : i32
    return %arg1, %c0_i32 : i32, i32
  }
  func.func @transform_1(%arg0: i32, %arg1: i32) -> (i32, i32) {
    %c0_i32 = arith.constant 0 : i32
    %c0_i32_0 = arith.constant 0 : i32
    %c0_i32_1 = arith.constant 0 : i32
    return %c0_i32, %c0_i32_0 : i32, i32
  }
  func.func @transform_2(%arg0: i32, %arg1: i32) -> (i32, i32) {
    %c0_i32 = arith.constant 0 : i32
    %c0_i32_0 = arith.constant 0 : i32
    %c0_i32_1 = arith.constant 0 : i32
    return %c0_i32, %c0_i32_0 : i32, i32
  }
  func.func @transform_3(%arg0: i32, %arg1: i32) -> (i32, i32) {
    %c0_i32 = arith.constant 0 : i32
    %c0_i32_0 = arith.constant 0 : i32
    %c0_i32_1 = arith.constant 0 : i32
    return %c0_i32, %c0_i32_0 : i32, i32
  }
  func.func @transform_4(%arg0: i32, %arg1: i32) -> (i32, i32) {
    %c0_i32 = arith.constant 0 : i32
    %c0_i32_0 = arith.constant 0 : i32
    %c0_i32_1 = arith.constant 0 : i32
    return %c0_i32, %c0_i32_0 : i32, i32
  }
  func.func @transform_5(%arg0: i32, %arg1: i32) -> (i32, i32) {
    %0 = arith.muli %arg0, %arg1 : i32
    %c0_i32 = arith.constant 0 : i32
    %c0_i32_0 = arith.constant 0 : i32
    return %0, %c0_i32 : i32, i32
  }
}

</mosaic_0001>

<bundles_post_ra>
// kernel: tpu_custom_call.1
= control target key start
LH: loop header
LB: loop body
LE: loop exit
PB: predicated region body
PF: predicated region fallthrough
CT: control target
= control target key end

     0   :  { %s2134_s0 = inlined_call_operand.hbm [shape: bf16[256,128], index: 0, kind: input, shape index: {}]   ;;  %s2135_s1 = inlined_call_operand.hbm [shape: bf16[128,128], index: 1, kind: input, shape index: {}]   ;;  %s2136_s2 = inlined_call_operand.vmem [shape: f32[1,128], index: 2, kind: input, shape index: {}]   ;;  %s2137_s3 = inlined_call_operand.hbm [shape: bf16[128,128], index: 3, kind: input, shape index: {}]   ;;  %s2138_s4 = inlined_call_operand.vmem [shape: f32[1,128], index: 4, kind: input, shape index: {}]   ;;  %s2139_s5 = inlined_call_operand.hbm [shape: f32[256,128], index: 5, kind: output, shape index: {}]  }
   0x1   :  { %2153 = sst [smem:[#allocation18_spill]] %s2135_s1 }
   0x2   :  { %2154 = sst [smem:[#allocation19_spill]] %s2137_s3 }
   0x3   :  { %2155 = sst [smem:[#allocation20_spill]] %s2139_s5 }
   0x4   :  { %10 = vsyncpa [#allocation5], 0 }
   0x5   :  { %12 = vsyncpa [#allocation5 + $0x1], 0 }
   0x6   :  { %13 = vsyncpa [#allocation8], 0 }
   0x7   :  { %14 = vsyncpa [#allocation6], 0 }
   0x8   :  { %16 = vsyncpa [#allocation6 + $0x1], 0  ;;  %s1632_s18 = smov 0   ;;  %s1634_s19 = smov 0  }
   0x9   :  { %s1636_s20 = smov 0   ;;  %s1638_s21 = smov 0  }
   0xa   :  { %s1640_s22 = smov 0   ;;  %s1642_s23 = smov 0  }
   0xb   :  { %s1644_s24 = smov 0   ;;  %s1646_s25 = smov 0  }
   0xc   :  { %s1648_s26 = smov 0   ;;  %s1650_s27 = smov 0  }
   0xd   :  { %s1652_s28 = smov 0  }
   0xe LB: > { %2156 = sst [smem:[#allocation14_spill]] %s1551_s18  ;;  %s1046_s29 = sadd.s32 4294967295, %s1591_s28   ;;  %s1591_s28 = sphi %s1652_s28, %s22_s28   ;;  %s1587_s27 = sphi %s1650_s27, %s2191_s27   ;;  %s1583_s26 = sphi %s1648_s26, %s2190_s26   ;;  %s1579_s25 = sphi %s1646_s25, %s2182_s25   ;;  %s1575_s24 = sphi %s1644_s24, %s2189_s24   ;;  %s1571_s23 = sphi %s1642_s23, %s2188_s23   ;;  %s1567_s22 = sphi %s1640_s22, %s2187_s22   ;;  %s1563_s21 = sphi %s1638_s21, %s2186_s21   ;;  %s1559_s20 = sphi %s1636_s20, %s2185_s20   ;;  %s1555_s19 = sphi %s1634_s19, %s2184_s19   ;;  %s1551_s18 = sphi %s1632_s18, %s2183_s18  }
   0xf   : > { %2157 = sst [smem:[#allocation15_spill]] %s1587_s27  ;;  %s1047_s30 = sadd.s32 4294967294, %s1591_s28  }
  0x10   : > { %p54_p0 = scmp.ne.s32.totalorder %s1567_s22, %s1563_s21  ;;  %p1688_p1 = scmp.eq.s32.totalorder %s1046_s29, 0 }
  0x11   : > { %p163_p2 = scmp.ne.s32.totalorder %s1559_s20, %s1555_s19  ;;  %p164_p4 = scmp.eq.s32.totalorder %s1046_s29, 3 }
  0x12   : > { %s2158_s6 = scalar_select %p1688_p1, 1, 0 }
  0x13   : > { %p1697_p3 = por %p1688_p1, %p54_p0  ;;  %p169_p5 = scmp.ne.s32.totalorder %s1555_s19, %s1551_s18 }
  0x14   : > { %p170_p6 = scmp.eq.s32.totalorder %s1047_s30, 3  ;;  %p1703_p7 = por %p164_p4, %p163_p2 }
  0x15   : > { %s2159_s8 = scalar_select %p1697_p3, 1, 0 }
  0x16   : > { %s2160_s9 = scalar_select %p1703_p7, 1, 0 }
  0x17   : > { %p1048_p8 = scmp.ge.s32.totalorder %s1591_s28, 1  ;;  %p1708_p9 = por %p170_p6, %p169_p5 }
  0x18   : > { %2161 = sst [smem:[#allocation16_spill]] %s2160_s9  ;;  %p177_p10 = scmp.lt.s32.totalorder %s1591_s28, 5 }
  0x19   : > { %s2162_s10 = scalar_select %p1708_p9, 1, 0 }
  0x1a   : > { %p1713_p11 = pnand %p1048_p8, %p177_p10  ;;  %s1593_s12 = smov [#allocation7]  }
  0x1b   : > { %2163 = sst [smem:[#allocation17_spill]] %s2162_s10  ;;  %s189_s13 = sshll.u32 %s1593_s12, 4  ;;  %s190_s13 = int_to_ptr.vmem [resolvable:$true] %s189_s13 }
  0x1c   : > { %s2164_s11 = scalar_select %p1713_p11, 1, 0 }
  0x1d   : > { %p1237_p12 = pneg %p1713_p11  ;;  %s1594_s15 = smov [#allocation9]  }
  0x1e   : > { %s205_s16 = sshll.u32 %s1594_s15, 4  ;;  %s2166_s1 = sld [smem:[#allocation18_spill]]  ;;  %s1725_s16 = int_to_ptr.vmem [resolvable:$true] %s205_s16 }
  0x1f   : > { %p1721_p13 = pnand %p1237_p12, %p1688_p1 }
  0x21   : > { %p1381_p2 = pneg %p1721_p13 }
  0x24   : > { %s1379_s29 = scalar_lea.hbm %s2166_s1, 1024 }
  0x25   : > { %p1380_p0 = scmp.ne.s32.totalorder %s2166_s1, %s1379_s29  ;;  %p1386_p6 = scmp.lt.u32.totalorder %s1379_s29, %s2166_s1 }
  0x27   : > { %p1382_p4 = pnand %p1381_p2, %p1380_p0 }
  0x29   : > { %p1383_p5 = pneg %p1382_p4 }
  0x2b   : > { %p1388_p8 = pnand %p1386_p6, %p1383_p5 }
  0x2d   : > { %1391 = shalt.err (!%p1388_p8)
}
  0x2e   : > { %s1392_s15 = scalar_lea.vmem %s190_s13, 1024  ;;  %p1400_p7 = scmp.lt.s32.totalorder %s190_s13, %s190_s13 }
  0x2f   : > { %p1393_p10 = scmp.ne.s32.totalorder %s190_s13, %s1392_s15  ;;  %p1401_p1 = scmp.lt.s32.totalorder %s1392_s15, %s1392_s15 }
  0x31   : > { %p1395_p12 = pnand %p1393_p10, %p1381_p2  ;;  %p1402_p3 = por %p1401_p1, %p1400_p7 }
  0x33   : > { %p1396_p9 = pneg %p1395_p12 }
  0x35   : > { %p1403_p11 = pnand %p1402_p3, %p1396_p9 }
  0x37   : > { %1406 = shalt.err (!%p1403_p11)
}
  0x38   : > { %s2150_s17 = smov 64   ;;  %s2151_s21 = smov 4  }
  0x39   : > { %1240 = dma.hbm_to_vmem [thread:$0]  (!%p1721_p13), %s2166_s1, 1024, %s190_s13, [#allocation8], %s2150_s17, %s2150_s17, %s2151_s21  }
  0x3a   : > { %s2167_s3 = sld [smem:[#allocation19_spill]] }
  0x40   : > { %s1407_s12 = scalar_lea.hbm %s2167_s3, 1024 }
  0x41   : > { %p1408_p1 = scmp.ne.s32.totalorder %s2167_s3, %s1407_s12  ;;  %p1414_p9 = scmp.lt.u32.totalorder %s1407_s12, %s2167_s3 }
  0x43   : > { %p1410_p3 = pnand %p1408_p1, %p1381_p2 }
  0x45   : > { %p1411_p7 = pneg %p1410_p3 }
  0x47   : > { %p1416_p11 = pnand %p1414_p9, %p1411_p7 }
  0x49   : > { %1419 = shalt.err (!%p1416_p11)
}
  0x4a   : > { %s1420_s13 = scalar_lea.vmem %s1725_s16, 1024  ;;  %p1428_p6 = scmp.lt.s32.totalorder %s1725_s16, %s1725_s16 }
  0x4b   : > { %p1421_p0 = scmp.ne.s32.totalorder %s1725_s16, %s1420_s13  ;;  %p1429_p8 = scmp.lt.s32.totalorder %s1420_s13, %s1420_s13 }
  0x4d   : > { %p1423_p4 = pnand %p1421_p0, %p1381_p2  ;;  %p1430_p10 = por %p1429_p8, %p1428_p6 }
  0x4f   : > { %p1424_p5 = pneg %p1423_p4 }
  0x51   : > { %p1431_p12 = pnand %p1430_p10, %p1424_p5 }
  0x53   : > { %1434 = shalt.err (!%p1431_p12)
}
  0x54   : > { %1243 = dma.hbm_to_vmem [thread:$0]  (!%p1721_p13), %s2167_s3, 1024, %s1725_s16, [#allocation8], %s2150_s17, %s2150_s17, %s2151_s21  }
  0x55   : > { %s31_s9 = sadd.s32 1, %s1583_s26  ;;  %s34_s14 = sadd.s32 1, %s1587_s27 }
  0x56   : > { %p32_p2 = scmp.ge.s32.totalorder %s31_s9, 2  ;;  %s41_s7 = sadd.s32 1, %s1571_s23 }
  0x57   : > { %p48_p1 = scmp.ne.s32.totalorder %s1571_s23, %s1567_s22  ;;  %p49_p3 = scmp.eq.s32.totalorder %s1591_s28, 0 }
  0x58   : > { %s2193_s9 = smov (%p32_p2, %s31_s9), 0  ;;  %s2195_s14 = smov (!%p32_p2, %s34_s14), %s1587_s27 }
  0x59   : > { %s38_s10 = ssub.s32 %s1583_s26, %s2193_s9  ;;  %p1791_p7 = por %p49_p3, %p48_p1 }
  0x5a   : > { %p36_p13 = scmp.ge.s32.totalorder %s2195_s14, 2  ;;  %p39_p9 = scmp.eq.s32.totalorder %s38_s10, 0 }
  0x5b   : > { %s148_s16 = smul.u32 %s1583_s26, %s1587_s27  ;;  %p1254_p11 = scmp.lt.s32.totalorder %s1591_s28, 4 }
  0x5c   : > { %s2197_s14 = smov (%p36_p13, %s2195_s14), 0  ;;  %s222_s15 = sand.u32 1, %s1571_s23  }
  0x5d   : > { %s1801_s30 = scalar_select %p39_p9, %s1571_s23, %s41_s7  }
  0x5e   : > { %s149_s12 = smul.u32 %s2197_s14, %s2193_s9  ;;  %s1052_s13 = sshll.u32 %s222_s15, 6 }
  0x5f   : > { %s1095_s18 = sshll.u32 %s1583_s26, 10  ;;  %s226_s10 = scalar_lea.vmem [#allocation4], %s1052_s13 }
  0x60   : > { %s150_s5 = ssub.s32 %s148_s16, %s149_s12  ;;  %s1810_s1 = scalar_lea.hbm %s2134_s0, %s1095_s18 }
  0x61   : > { %p151_p0 = scmp.eq.s32.totalorder %s150_s5, 0  ;;  %s233_s3 = sshll.u32 %s226_s10, 4  ;;  %s1817_s3 = int_to_ptr.vmem [resolvable:$true] %s233_s3 }
  0x62   : > { %s2169_s27 = sadd.s32 1, %s1559_s20  ;;  %p1823_p4 = pnand %p1254_p11, %p1791_p7 }
  0x63   : > { %s1815_s7 = scalar_select %p151_p0, %s1559_s20, %s2169_s27  }
  0x64   : > { %s1827_s17 = scalar_lea.sflag [#allocation5], %s222_s15  ;;  %s1435_s21 = scalar_lea.hbm %s1810_s1, 1024 }
  0x65   : > { %p1436_p5 = scmp.ne.s32.totalorder %s1810_s1, %s1435_s21  ;;  %p1437_p6 = pneg %p1823_p4 }
  0x66   : > { %s1440_s29 = scalar_lea.hbm %s2134_s0, 2048  ;;  %p1441_p12 = scmp.lt.u32.totalorder %s1810_s1, %s2134_s0 }
  0x67   : > { %p1438_p8 = pnand %p1437_p6, %p1436_p5  ;;  %p1442_p2 = scmp.lt.u32.totalorder %s1440_s29, %s1435_s21 }
  0x68   : > { %p1444_p3 = scmp.lt.u32.totalorder %s1435_s21, %s1810_s1 }
  0x69   : > { %p1439_p10 = pneg %p1438_p8  ;;  %p1443_p1 = por %p1442_p2, %p1441_p12 }
  0x6b   : > { %p1445_p7 = por %p1444_p3, %p1443_p1 }
  0x6d   : > { %p1446_p13 = pnand %p1445_p7, %p1439_p10 }
  0x6f   : > { %1449 = shalt.err (!%p1446_p13)
}
  0x70   : > { %s1450_s15 = scalar_lea.vmem %s1817_s3, 1024  ;;  %s1597_s18 = smov [#allocation4]  }
  0x71   : > { %p1451_p9 = scmp.ne.s32.totalorder %s1817_s3, %s1450_s15  ;;  %s1455_s10 = sshll.u32 %s1597_s18, 4  ;;  %s1456_s10 = int_to_ptr.vmem [resolvable:$false] %s1455_s10 }
  0x72   : > { %s1457_s27 = scalar_lea.vmem %s1456_s10, 2048  ;;  %p1458_p5 = scmp.lt.s32.totalorder %s1817_s3, %s1456_s10 }
  0x73   : > { %p1453_p11 = pnand %p1451_p9, %p1437_p6  ;;  %p1459_p8 = scmp.lt.s32.totalorder %s1457_s27, %s1450_s15 }
  0x75   : > { %p1454_p0 = pneg %p1453_p11  ;;  %p1460_p12 = por %p1459_p8, %p1458_p5 }
  0x77   : > { %p1461_p2 = pnand %p1460_p12, %p1454_p0 }
  0x79   : > { %1464 = shalt.err (!%p1461_p2)
}
  0x7a   : > { %s2171_s21 = smov 4   ;;  %s2172_s12 = smov 64  }
  0x7b   : > { %1247 = dma.hbm_to_vmem [thread:$0]  (!%p1823_p4), %s1810_s1, 1024, %s1817_s3, %s1827_s17, %s2172_s12, %s2172_s12, %s2171_s21  }
  0x7c   : > { %p2173_p6 = scmp.ne.s32.totalorder %s2164_s11, 0 }
  0x7d   : > { %s247_s29 = sand.u32 (!%p2173_p6), 1, %s1567_s22   ;;  %p2174_p10 = scmp.ne.s32.totalorder (!%p2173_p6), %s2159_s8, 0 }
  0x7e   : > { %245 = sbr.rel (%p2173_p6) target bundleno = 749 (0x2ed), region = 40  ;;  %s1056_s13 = sshll.u32 (!%p2173_p6), %s247_s29, 6 }
  0x7f   : > { %s248_s5 = scalar_lea.sflag (!%p2173_p6), [#allocation5], %s247_s29  ;;  %s1861_s15 = scalar_lea.vmem (!%p2173_p6), [#allocation4], %s1056_s13 }
  0x85   : > { %1538 = dma.done.wait (%p2174_p10), %s248_s5, 1024  }
  0x86   : > { %1540 = vsyncadd (%p2174_p10), %s248_s5, 4294966272  ;;  %p2175_p1 = scmp.ne.s32.totalorder %s2158_s6, 0 }
  0x88   : > { %1542 = dma.done.wait (%p2175_p1), [#allocation8], 2048  }
  0x89   : > { %1544 = vsyncadd (%p2175_p1), [#allocation8], 4294965248  ;;  %s283_s1 = sand.u32 1, %s1555_s19   ;;  %v1353_v0 = vld [vmem:[#allocation7] sm:$0xff]   ;;  %v1354_v1 = vld [vmem:[#allocation7 + $0x8] sm:$0xff]   ;;  %p1077_p4 = scmp.ne.s32.totalorder %s1579_s25, 0 }
  0x8a   : > { %s1874_s3 = sshll.u32 %s283_s1, 7  ;;  %1129 = vmatprep.subr.bf16.mxu0 %v1353_v0  ;;  %1193 = vmatprep.subr.bf16.mxu1 %v1353_v0  ;;  %v1355_v2 = vld [vmem:[#allocation7 + $0x10] sm:$0xff]   ;;  %v1356_v3 = vld [vmem:[#allocation7 + $0x18] sm:$0xff]   ;;  %v1361_v4 = vld [vmem:[%s1861_s15] sm:$0xff]   ;;  %p1078_p3 = scmp.ne.s32.totalorder (!%p1077_p4), %s1575_s24, 0 }
  0x8b   : > { %1130 = vmatpush3.bf16.msra.mxu0 %v1353_v0  ;;  %1201 = vmatpush3.bf16.msra.mxu1 %v1353_v0  ;;  %v1362_v5 = vld [vmem:[%s1861_s15 + $0x20] sm:$0xff]   ;;  %v1358_v7 = vld [vmem:[#allocation7 + $0x28] sm:$0xff]   ;;  %v1359_v8 = vld [vmem:[#allocation7 + $0x30] sm:$0xff]   ;;  %s1936_s11 = scalar_lea.vmem [#allocation10], %s1874_s3 }
  0x8c   : > { %1131 = vmatprep.subr.bf16.mxu0 %v1354_v1  ;;  %1194 = vmatprep.subr.bf16.mxu1 %v1354_v1  ;;  %v1357_v6 = vld [vmem:[#allocation7 + $0x20] sm:$0xff]   ;;  %v1360_v9 = vld [vmem:[#allocation7 + $0x38] sm:$0xff]   ;;  %v1363_v10 = vld [vmem:[%s1861_s15 + $0x8] sm:$0xff]  }
  0x8d   : > { %1145 = vmatprep.mubr.bf16.mxu0 %v1361_v4  ;;  %1153 = vmatprep.mubr.bf16.mxu1 %v1362_v5  ;;  %v1364_v11 = vld [vmem:[%s1861_s15 + $0x28] sm:$0xff]   ;;  %v1365_v12 = vld [vmem:[%s1861_s15 + $0x10] sm:$0xff]   ;;  %v1367_v14 = vld [vmem:[%s1861_s15 + $0x18] sm:$0xff]  }
  0x8e   : > { %v1366_v13 = vld [vmem:[%s1861_s15 + $0x30] sm:$0xff]   ;;  %v1368_v15 = vld [vmem:[%s1861_s15 + $0x38] sm:$0xff]  }
  0x8f   : > { %1132 = vmatpush3.bf16.msra.mxu0 %v1354_v1  ;;  %1202 = vmatpush3.bf16.msra.mxu1 %v1354_v1  ;;  %v1060_v16 = vld [vmem:[%s2136_s2] ss:$0 sm:$0xff] }
  0x90   : > { %1133 = vmatprep.subr.bf16.mxu0 %v1355_v2  ;;  %1195 = vmatprep.subr.bf16.mxu1 %v1355_v2 }
  0x93   : > { %1134 = vmatpush3.bf16.msra.mxu0 %v1355_v2  ;;  %1203 = vmatpush3.bf16.msra.mxu1 %v1355_v2 }
  0x94   : > { %1135 = vmatprep.subr.bf16.mxu0 %v1356_v3  ;;  %1196 = vmatprep.subr.bf16.mxu1 %v1356_v3 }
  0x97   : > { %1136 = vmatpush3.bf16.msra.mxu0 %v1356_v3  ;;  %1204 = vmatpush3.bf16.msra.mxu1 %v1356_v3 }
  0x98   : > { %1137 = vmatprep.subr.bf16.mxu0 %v1357_v6  ;;  %1197 = vmatprep.subr.bf16.mxu1 %v1357_v6 }
  0x9b   : > { %1138 = vmatpush3.bf16.msra.mxu0 %v1357_v6  ;;  %1205 = vmatpush3.bf16.msra.mxu1 %v1357_v6 }
  0x9c   : > { %1139 = vmatprep.subr.bf16.mxu0 %v1358_v7  ;;  %1198 = vmatprep.subr.bf16.mxu1 %v1358_v7 }
  0x9f   : > { %1140 = vmatpush3.bf16.msra.mxu0 %v1358_v7  ;;  %1206 = vmatpush3.bf16.msra.mxu1 %v1358_v7 }
  0xa0   : > { %1141 = vmatprep.subr.bf16.mxu0 %v1359_v8  ;;  %1199 = vmatprep.subr.bf16.mxu1 %v1359_v8 }
  0xa3   : > { %1142 = vmatpush3.bf16.msra.mxu0 %v1359_v8  ;;  %1207 = vmatpush3.bf16.msra.mxu1 %v1359_v8 }
  0xa4   : > { %1143 = vmatprep.subr.bf16.mxu0 %v1360_v9  ;;  %1200 = vmatprep.subr.bf16.mxu1 %v1360_v9 }
  0xa7   : > { %1144 = vmatpush3.bf16.msra.mxu0 %v1360_v9  ;;  %1208 = vmatpush3.bf16.msra.mxu1 %v1360_v9 }
  0xaa   : > { %1146 = vmatmul.mubr.bf16.vlgmr.msra.gmra.mrb[0].mxu0 %v1363_v10  ;;  %1154 = vmatmul.mubr.bf16.vlgmr.msra.gmra.mrb[0].mxu1 %v1364_v11 }
  0xab   : > { %1149 = vmatprep.mubr.bf16.mxu0 %v1365_v12  ;;  %1157 = vmatprep.mubr.bf16.mxu1 %v1366_v13 }
  0xb2   : > { %1150 = vmatmul.mubr.bf16.gmra.mrb[4].mxu0 %v1367_v14  ;;  %1158 = vmatmul.mubr.bf16.gmra.mrb[4].mxu1 %v1368_v15 }
 0x17d   : > { %v1147_v17 = vpop.f32.mrb[0].mxu0  ;;  %v1155_v18 = vpop.f32.mrb[0].mxu1 }
 0x17e   : > { %v1887_v19 = vadd.f32 %v1147_v17, %v1060_v16  ;;  %v1889_v20 = vadd.f32 %v1155_v18, %v1060_v16  ;;  %v459_v21 = vpop.f32.mrb[1].mxu0  ;;  %v491_v22 = vpop.f32.mrb[1].mxu1 }
 0x17f   : > { %v1891_v23 = vadd.f32 %v1060_v16, %v459_v21  ;;  %v1893_v24 = vadd.f32 %v1060_v16, %v491_v22  ;;  %v1148_v25 = vpop.f32.mrb[2].mxu0  ;;  %v1156_v26 = vpop.f32.mrb[2].mxu1 }
 0x180   : > { %v524_v27 = vmax.f32 %v1887_v19, 0.0  ;;  %v532_v28 = vmax.f32 %v1889_v20, 0.0  ;;  %v1897_v29 = vadd.f32 %v1148_v25, %v1060_v16  ;;  %v1899_v30 = vadd.f32 %v1156_v26, %v1060_v16  ;;  %v462_v31 = vpop.f32.mrb[3].mxu0  ;;  %v494_v32 = vpop.f32.mrb[3].mxu1 }
 0x181   : > { %v522_v33 = vmax.f32 %v1891_v23, 0.0  ;;  %v530_v34 = vmax.f32 %v1893_v24, 0.0  ;;  %v1903_v35 = vadd.f32 %v1060_v16, %v462_v31  ;;  %v1905_v36 = vadd.f32 %v1060_v16, %v494_v32 }
 0x182   : > { %v525_v37 = vmax.f32 %v1897_v29, 0.0  ;;  %v533_v38 = vmax.f32 %v1899_v30, 0.0 }
 0x183   : > { %v523_v39 = vmax.f32 %v1903_v35, 0.0  ;;  %v531_v40 = vmax.f32 %v1905_v36, 0.0 }
 0x185   : > { %v1151_v41 = vpop.f32.mrb[4].mxu0  ;;  %v1159_v42 = vpop.f32.mrb[4].mxu1  ;;  %541 = sbr.rel (%p1077_p4) target bundleno = 461 (0x1cd), region = 56 }
 0x186   : > { %v1911_v43 = vadd.f32 %v1151_v41, %v1060_v16  ;;  %v1913_v44 = vadd.f32 %v1159_v42, %v1060_v16  ;;  %v475_v45 = vpop.f32.mrb[5].mxu0  ;;  %v507_v46 = vpop.f32.mrb[5].mxu1 }
 0x187   : > { %v1915_v47 = vadd.f32 %v1060_v16, %v475_v45  ;;  %v1917_v48 = vadd.f32 %v1060_v16, %v507_v46  ;;  %v1152_v49 = vpop.f32.mrb[6].mxu0  ;;  %v1160_v50 = vpop.f32.mrb[6].mxu1 }
 0x188   : > { %v528_v51 = vmax.f32 %v1911_v43, 0.0  ;;  %v536_v52 = vmax.f32 %v1913_v44, 0.0  ;;  %v1921_v53 = vadd.f32 %v1152_v49, %v1060_v16  ;;  %v1923_v54 = vadd.f32 %v1160_v50, %v1060_v16  ;;  %v478_v55 = vpop.f32.mrb[7].mxu0  ;;  %v510_v56 = vpop.f32.mrb[7].mxu1 }
 0x189   : > { %v526_v57 = vmax.f32 %v1915_v47, 0.0  ;;  %v534_v58 = vmax.f32 %v1917_v48, 0.0  ;;  %v1927_v59 = vadd.f32 %v1060_v16, %v478_v55  ;;  %v1929_v60 = vadd.f32 %v1060_v16, %v510_v56 }
 0x18a   : > { %v529_v61 = vmax.f32 %v1921_v53, 0.0  ;;  %v537_v62 = vmax.f32 %v1923_v54, 0.0 }
 0x18b   : > { %v527_v63 = vmax.f32 %v1927_v59, 0.0  ;;  %v535_v0 = vmax.f32 %v1929_v60, 0.0 }
 0x18c   : > { %545 = sbr.rel (%p1078_p3) target bundleno = 403 (0x193), region = 60  ;;  %v1598_v1 = vmov (!%p1078_p3), 0.0  }
 0x18d   : > { %546 = vst [vmem:[#allocation2] sm:$0x1] (!%p1078_p3), %v1598_v1  ;;  %547 = vst [vmem:[#allocation3] sm:$0x1] (!%p1078_p3), %v1598_v1 }
 0x193 PF: > { %v549_v2 = vlaneseq  ;;  %s1079_s16 = sshll.u32 %s1575_s24, 7 }
 0x194   : > { %v1944_v5 = vstv %s1079_s16 }
 0x195   : > { %v1940_v3 = vshrl.u32 %v549_v2, 7 }
 0x197   : > { %v551_v4 = vadd.s32 8, %v1940_v3  ;;  %v552_v6 = vadd.s32 16, %v1940_v3  ;;  %v553_v7 = vadd.s32 24, %v1940_v3  ;;  %v567_v8 = vadd.s32 %v1944_v5, %v1940_v3 }
 0x198   : > { %v554_v10 = vadd.s32 32, %v1940_v3  ;;  %v555_v12 = vadd.s32 40, %v1940_v3  ;;  %v556_v14 = vadd.s32 48, %v1940_v3  ;;  %v557_v18 = vadd.s32 56, %v1940_v3 }
 0x199   : > { %v568_v9 = vadd.s32 %v1944_v5, %v551_v4  ;;  %v569_v11 = vadd.s32 %v1944_v5, %v552_v6  ;;  %v570_v13 = vadd.s32 %v1944_v5, %v553_v7  ;;  %vm583_vm0 = vcmp.lt.s32.totalorder %v567_v8, 200 }
 0x19a   : > { %v571_v15 = vadd.s32 %v1944_v5, %v554_v10  ;;  %v599_v16 = vsel %vm583_vm0, %v522_v33, 0.0  ;;  %v572_v21 = vadd.s32 %v1944_v5, %v555_v12  ;;  %v558_v22 = vadd.s32 64, %v1940_v3 }
 0x19b   : > { %vm584_vm1 = vcmp.lt.s32.totalorder %v568_v9, 200  ;;  %vm585_vm2 = vcmp.lt.s32.totalorder %v569_v11, 200  ;;  %vm586_vm3 = vcmp.lt.s32.totalorder %v570_v13, 200  ;;  %v573_v31 = vadd.s32 %v1944_v5, %v556_v14 }
 0x19c   : > { %v600_v17 = vsel %vm584_vm1, %v523_v39, 0.0  ;;  %v601_v25 = vsel %vm585_vm2, %v524_v27, 0.0  ;;  %vm587_vm4 = vcmp.lt.s32.totalorder %v571_v15, 200  ;;  %v640_v32 = vmul.f32 %v599_v16, %v599_v16 }
 0x19d   : > { %v616_v26 = vadd.f32 %v600_v17, %v599_v16  ;;  %v641_v41 = vmul.f32 %v600_v17, %v600_v17  ;;  %v602_v42 = vsel %vm586_vm3, %v525_v37, 0.0  ;;  %v559_v46 = vadd.s32 72, %v1940_v3 }
 0x19e   : > { %v574_v49 = vadd.s32 %v1944_v5, %v557_v18  ;;  %vm588_vm5 = vcmp.lt.s32.totalorder %v572_v21, 200  ;;  %v642_v50 = vmul.f32 %v601_v25, %v601_v25  ;;  %v560_v55 = vadd.s32 80, %v1940_v3 }
 0x19f   : > { %v617_v45 = vadd.f32 %v616_v26, %v601_v25  ;;  %v603_v56 = vsel %vm587_vm4, %v526_v57, 0.0  ;;  %v575_v2 = vadd.s32 %v1944_v5, %v558_v22  ;;  %vm589_vm6 = vcmp.lt.s32.totalorder %v573_v31, 200 }
 0x1a0   : > { %v643_v4 = vmul.f32 %v602_v42, %v602_v42  ;;  %v656_v6 = vadd.f32 %v641_v41, %v640_v32  ;;  %v561_v7 = vadd.s32 88, %v1940_v3  ;;  %v604_v8 = vsel %vm588_vm5, %v527_v63, 0.0 }
 0x1a1   : > { %v618_v1 = vadd.f32 %v617_v45, %v602_v42  ;;  %v576_v10 = vadd.s32 %v1944_v5, %v559_v46  ;;  %vm590_vm7 = vcmp.lt.s32.totalorder %v574_v49, 200  ;;  %v644_v11 = vmul.f32 %v603_v56, %v603_v56 }
 0x1a2   : > { %v657_v12 = vadd.f32 %v656_v6, %v642_v50  ;;  %v562_v13 = vadd.s32 96, %v1940_v3  ;;  %v605_v14 = vsel %vm589_vm6, %v528_v51, 0.0  ;;  %v577_v16 = vadd.s32 %v1944_v5, %v560_v55 }
 0x1a3   : > { %v619_v9 = vadd.f32 %v618_v1, %v603_v56  ;;  %vm591_vm8 = vcmp.lt.s32.totalorder %v575_v2, 200  ;;  %v645_v17 = vmul.f32 %v604_v8, %v604_v8  ;;  %v563_v21 = vadd.s32 104, %v1940_v3 }
 0x1a4   : > { %v658_v18 = vadd.f32 %v657_v12, %v643_v4  ;;  %v606_v22 = vsel %vm590_vm7, %v529_v61, 0.0  ;;  %v578_v26 = vadd.s32 %v1944_v5, %v561_v7  ;;  %vm592_vm9 = vcmp.lt.s32.totalorder %v576_v10, 200 }
 0x1a5   : > { %v620_v15 = vadd.f32 %v619_v9, %v604_v8  ;;  %v646_v31 = vmul.f32 %v605_v14, %v605_v14  ;;  %v564_v41 = vadd.s32 112, %v1940_v3  ;;  %v607_v42 = vsel %vm591_vm8, %v530_v34, 0.0 }
 0x1a6   : > { %v659_v32 = vadd.f32 %v658_v18, %v644_v11  ;;  %v579_v46 = vadd.s32 %v1944_v5, %v562_v13  ;;  %vm593_vm10 = vcmp.lt.s32.totalorder %v577_v16, 200  ;;  %v647_v49 = vmul.f32 %v606_v22, %v606_v22 }
 0x1a7   : > { %v621_v25 = vadd.f32 %v620_v15, %v605_v14  ;;  %v565_v55 = vadd.s32 120, %v1940_v3  ;;  %v608_v56 = vsel %vm592_vm9, %v531_v40, 0.0  ;;  %v580_v2 = vadd.s32 %v1944_v5, %v563_v21 }
 0x1a8   : > { %v660_v50 = vadd.f32 %v659_v32, %v645_v17  ;;  %vm594_vm11 = vcmp.lt.s32.totalorder %v578_v26, 200  ;;  %v648_v4 = vmul.f32 %v607_v42, %v607_v42  ;;  %v609_v7 = vsel %vm593_vm10, %v532_v28, 0.0 }
 0x1a9   : > { %v622_v45 = vadd.f32 %v621_v25, %v606_v22  ;;  %v581_v9 = vadd.s32 %v1944_v5, %v564_v41  ;;  %vm595_vm12 = vcmp.lt.s32.totalorder %v579_v46, 200  ;;  %v649_v10 = vmul.f32 %v608_v56, %v608_v56 }
 0x1aa   : > { %v661_v6 = vadd.f32 %v660_v50, %v646_v31  ;;  %v610_v3 = vsel %vm594_vm11, %v533_v38, 0.0  ;;  %v582_v13 = vadd.s32 %v1944_v5, %v565_v55  ;;  %vm596_vm13 = vcmp.lt.s32.totalorder %v580_v2, 200 }
 0x1ab   : > { %v623_v1 = vadd.f32 %v622_v45, %v607_v42  ;;  %v650_v14 = vmul.f32 %v609_v7, %v609_v7  ;;  %v611_v16 = vsel %vm595_vm12, %v534_v58, 0.0  ;;  %vm597_vm14 = vcmp.lt.s32.totalorder %v581_v9, 200 }
 0x1ac   : > { %v662_v11 = vadd.f32 %v661_v6, %v647_v49  ;;  %v651_v18 = vmul.f32 %v610_v3, %v610_v3  ;;  %v612_v22 = vsel %vm596_vm13, %v535_v0, 0.0  ;;  %vm598_vm15 = vcmp.lt.s32.totalorder %v582_v13, 200 }
 0x1ad   : > { %v624_v8 = vadd.f32 %v623_v1, %v608_v56  ;;  %v652_v26 = vmul.f32 %v611_v16, %v611_v16  ;;  %v613_v5 = vsel %vm597_vm14, %v536_v52, 0.0  ;;  %v653_v41 = vmul.f32 %v612_v22, %v612_v22 }
 0x1ae   : > { %v663_v15 = vadd.f32 %v662_v11, %v648_v4  ;;  %v614_v45 = vsel %vm598_vm15, %v537_v62, 0.0  ;;  %v654_v49 = vmul.f32 %v613_v5, %v613_v5 }
 0x1af   : > { %v625_v12 = vadd.f32 %v624_v8, %v609_v7  ;;  %v655_v56 = vmul.f32 %v614_v45, %v614_v45 }
 0x1b0   : > { %v664_v21 = vadd.f32 %v663_v15, %v649_v10 }
 0x1b1   : > { %v626_v17 = vadd.f32 %v625_v12, %v610_v3  ;;  %v615_v12 = vld [vmem:[#allocation2] sm:$0x1] }
 0x1b2   : > { %v665_v31 = vadd.f32 %v664_v21, %v650_v14 }
 0x1b3   : > { %v627_v25 = vadd.f32 %v626_v17, %v611_v16 }
 0x1b4   : > { %v666_v42 = vadd.f32 %v665_v31, %v651_v18  ;;  %v639_v18 = vld [vmem:[#allocation3] sm:$0x1] }
 0x1b5   : > { %v628_v32 = vadd.f32 %v627_v25, %v612_v22 }
 0x1b6   : > { %v667_v50 = vadd.f32 %v666_v42, %v652_v26 }
 0x1b7   : > { %v629_v46 = vadd.f32 %v628_v32, %v613_v5 }
 0x1b8   : > { %v668_v1 = vadd.f32 %v667_v50, %v653_v41 }
 0x1b9   : > { %v630_v55 = vadd.f32 %v629_v46, %v614_v45 }
 0x1ba   : > { %v669_v4 = vadd.f32 %v668_v1, %v654_v49 }
 0x1bb   : > { %v631_v2 = vrot.slane %v630_v55, 4 }
 0x1bc   : > { %v670_v7 = vadd.f32 %v669_v4, %v655_v56 }
 0x1bd   : > { %v632_v6 = vadd.f32 %v631_v2, %v630_v55 }
 0x1be   : > { %v671_v9 = vrot.slane %v670_v7, 4 }
 0x1bf   : > { %v633_v8 = vrot.slane %v632_v6, 2 }
 0x1c0   : > { %v672_v11 = vadd.f32 %v671_v9, %v670_v7 }
 0x1c1   : > { %v634_v10 = vadd.f32 %v633_v8, %v632_v6 }
 0x1c2   : > { %v673_v13 = vrot.slane %v672_v11, 2 }
 0x1c3   : > { %v635_v3 = vrot.slane %v634_v10, 1 }
 0x1c4   : > { %v674_v15 = vadd.f32 %v673_v13, %v672_v11 }
 0x1c5   : > { %v636_v14 = vadd.f32 %v635_v3, %v634_v10 }
 0x1c6   : > { %v675_v17 = vrot.slane %v674_v15, 1 }
 0x1c7   : > { %v637_v16 = vadd.f32 %v636_v14, %v615_v12 }
 0x1c8   : > { %v676_v21 = vadd.f32 %v675_v17, %v674_v15 }
 0x1c9   : > { %638 = vst [vmem:[#allocation2] sm:$0x1] %v637_v16 }
 0x1ca   : > { %v677_v22 = vadd.f32 %v676_v21, %v639_v18 }
 0x1cc   : > { %678 = vst [vmem:[#allocation3] sm:$0x1] %v677_v22 }
 0x1cd PF: > { %p1080_p7 = scmp.ne.s32.totalorder %s1579_s25, 1 }
 0x1ce   : > { %v1369_v25 = vld [vmem:[#allocation9] sm:$0xff] (!%p1080_p7)   ;;  %v1370_v26 = vld [vmem:[#allocation9 + $0x8] sm:$0xff] (!%p1080_p7)   ;;  %v1371_v31 = vld [vmem:[#allocation9 + $0x10] sm:$0xff] (!%p1080_p7)   ;;  %v691_v49 = vlaneseq (!%p1080_p7) }
 0x1cf   : > { %682 = sbr.rel (%p1080_p7) target bundleno = 721 (0x2d1), region = 64  ;;  %1161 = vmatprep.subr.bf16.mxu0 (!%p1080_p7), %v1369_v25  ;;  %1209 = vmatprep.subr.bf16.mxu1 (!%p1080_p7), %v1369_v25  ;;  %v1372_v5 = vld [vmem:[#allocation9 + $0x18] sm:$0xff] (!%p1080_p7)   ;;  %v1373_v50 = vld [vmem:[#allocation9 + $0x20] sm:$0xff] (!%p1080_p7)   ;;  %v1374_v2 = vld [vmem:[#allocation9 + $0x28] sm:$0xff] (!%p1080_p7)  }
 0x1d0   : > { %1162 = vmatpush3.bf16.msra.mxu0 (!%p1080_p7), %v1369_v25  ;;  %1217 = vmatpush3.bf16.msra.mxu1 (!%p1080_p7), %v1369_v25  ;;  %v683_v32 = vld [vmem:[#allocation2] sm:$0x1] (!%p1080_p7)  ;;  %v692_v1 = vshrl.u32 (!%p1080_p7), %v691_v49, 7  ;;  %v1375_v7 = vld [vmem:[#allocation9 + $0x30] sm:$0xff] (!%p1080_p7)  }
 0x1d1   : > { %1163 = vmatprep.subr.bf16.mxu0 (!%p1080_p7), %v1370_v26  ;;  %1210 = vmatprep.subr.bf16.mxu1 (!%p1080_p7), %v1370_v26  ;;  %v684_v42 = vmul.f32 (!%p1080_p7), 0.005, %v683_v32  ;;  %v1376_v9 = vld [vmem:[#allocation9 + $0x38] sm:$0xff] (!%p1080_p7)  }
 0x1d2   : > { %v693_v6 = vsub.s32 (!%p1080_p7), 0, %v692_v1  ;;  %v1081_v21 = vld [vmem:[%s2138_s4] ss:$0 sm:$0xff] (!%p1080_p7) }
 0x1d3   : > { %v685_v41 = vld [vmem:[#allocation3] sm:$0x1] (!%p1080_p7)  ;;  %v687_v46 = vmul.f32 (!%p1080_p7), %v684_v42, %v684_v42 }
 0x1d4   : > { %1164 = vmatpush3.bf16.msra.mxu0 (!%p1080_p7), %v1370_v26  ;;  %1218 = vmatpush3.bf16.msra.mxu1 (!%p1080_p7), %v1370_v26  ;;  %v686_v45 = vmul.f32 (!%p1080_p7), 0.005, %v685_v41  ;;  %v694_v8 = vrot.slane (!%p1080_p7), %v684_v42, %v693_v6 }
 0x1d5   : > { %1165 = vmatprep.subr.bf16.mxu0 (!%p1080_p7), %v1371_v31  ;;  %1211 = vmatprep.subr.bf16.mxu1 (!%p1080_p7), %v1371_v31 }
 0x1d6   : > { %v688_v55 = vsub.f32 %v686_v45, %v687_v46  ;;  %v696_v10 = vsub.f32 %v522_v33, %v694_v8  ;;  %v697_v11 = vsub.f32 %v523_v39, %v694_v8  ;;  %v704_v3 = vsub.f32 %v530_v34, %v694_v8 }
 0x1d7   : > { %v705_v12 = vsub.f32 %v531_v40, %v694_v8  ;;  %v698_v13 = vsub.f32 %v524_v27, %v694_v8  ;;  %v699_v14 = vsub.f32 %v525_v37, %v694_v8  ;;  %v706_v23 = vsub.f32 %v532_v28, %v694_v8 }
 0x1d8   : > { %1166 = vmatpush3.bf16.msra.mxu0 %v1371_v31  ;;  %1219 = vmatpush3.bf16.msra.mxu1 %v1371_v31  ;;  %v689_v56 = vmax.f32 %v688_v55, 0.0  ;;  %v707_v33 = vsub.f32 %v533_v38, %v694_v8  ;;  %v700_v24 = vsub.f32 %v526_v57, %v694_v8  ;;  %v701_v34 = vsub.f32 %v527_v63, %v694_v8 }
 0x1d9   : > { %1167 = vmatprep.subr.bf16.mxu0 %v1372_v5  ;;  %1212 = vmatprep.subr.bf16.mxu1 %v1372_v5  ;;  %v708_v19 = vsub.f32 %v534_v58, %v694_v8  ;;  %v709_v27 = vsub.f32 %v535_v0, %v694_v8  ;;  %v702_v20 = vsub.f32 %v528_v51, %v694_v8 }
 0x1da   : > { %v712_v4 = vadd.f32 1e-05, %v689_v56  ;;  %v703_v28 = vsub.f32 %v529_v61, %v694_v8  ;;  %v710_v29 = vsub.f32 %v536_v52, %v694_v8  ;;  %v711_v30 = vsub.f32 %v537_v62, %v694_v8 }
 0x1dc   : > { %1168 = vmatpush3.bf16.msra.mxu0 %v1372_v5  ;;  %1220 = vmatpush3.bf16.msra.mxu1 %v1372_v5  ;;  %1377 = vrsqrt.f32 %v712_v4 }
 0x1dd   : > { %1169 = vmatprep.subr.bf16.mxu0 %v1373_v50  ;;  %1213 = vmatprep.subr.bf16.mxu1 %v1373_v50 }
 0x1e0   : > { %1170 = vmatpush3.bf16.msra.mxu0 %v1373_v50  ;;  %1221 = vmatpush3.bf16.msra.mxu1 %v1373_v50 }
 0x1e1   : > { %1171 = vmatprep.subr.bf16.mxu0 %v1374_v2  ;;  %1214 = vmatprep.subr.bf16.mxu1 %v1374_v2 }
 0x1e4   : > { %1172 = vmatpush3.bf16.msra.mxu0 %v1374_v2  ;;  %1222 = vmatpush3.bf16.msra.mxu1 %v1374_v2 }
 0x1e5   : > { %1173 = vmatprep.subr.bf16.mxu0 %v1375_v7  ;;  %1215 = vmatprep.subr.bf16.mxu1 %v1375_v7 }
 0x1e6   : > { %v1378_v15 = vpop.eup %1377 }
 0x1e7   : > { %v718_v35 = vrot.slane %v1378_v15, %v693_v6 }
 0x1e8   : > { %1174 = vmatpush3.bf16.msra.mxu0 %v1375_v7  ;;  %1223 = vmatpush3.bf16.msra.mxu1 %v1375_v7 }
 0x1e9   : > { %1175 = vmatprep.subr.bf16.mxu0 %v1376_v9  ;;  %1216 = vmatprep.subr.bf16.mxu1 %v1376_v9  ;;  %v720_v36 = vmul.f32 %v718_v35, %v696_v10  ;;  %v721_v37 = vmul.f32 %v718_v35, %v697_v11  ;;  %v728_v38 = vmul.f32 %v718_v35, %v704_v3 }
 0x1ea   : > { %v729_v39 = vmul.f32 %v718_v35, %v705_v12  ;;  %v722_v40 = vmul.f32 %v718_v35, %v698_v13  ;;  %v723_v47 = vmul.f32 %v718_v35, %v699_v14  ;;  %v730_v48 = vmul.f32 %v718_v35, %v706_v23 }
 0x1eb   : > { %v731_v43 = vmul.f32 %v718_v35, %v707_v33  ;;  %v736_v51 = vpack.c.bf16 %v721_v37, %v720_v36  ;;  %v724_v58 = vmul.f32 %v718_v35, %v700_v24  ;;  %v725_v59 = vmul.f32 %v718_v35, %v701_v34 }
 0x1ec   : > { %1176 = vmatpush3.bf16.msra.mxu0 %v1376_v9  ;;  %1224 = vmatpush3.bf16.msra.mxu1 %v1376_v9  ;;  %v740_v57 = vpack.c.bf16 %v729_v39, %v728_v38  ;;  %v737_v53 = vpack.c.bf16 %v723_v47, %v722_v40  ;;  %v732_v61 = vmul.f32 %v718_v35, %v708_v19 }
 0x1ed   : > { %v741_v60 = vpack.c.bf16 %v731_v43, %v730_v48  ;;  %v733_v44 = vmul.f32 %v718_v35, %v709_v27  ;;  %1177 = vmatprep.mubr.bf16.mxu0 %v736_v51  ;;  %v738_v52 = vpack.c.bf16 %v725_v59, %v724_v58  ;;  %v726_v54 = vmul.f32 %v718_v35, %v702_v20 }
 0x1ee   : > { %1185 = vmatprep.mubr.bf16.mxu1 %v740_v57  ;;  %v727_v62 = vmul.f32 %v718_v35, %v703_v28  ;;  %v734_v0 = vmul.f32 %v718_v35, %v710_v29  ;;  %v735_v16 = vmul.f32 %v718_v35, %v711_v30 }
 0x1ef   : > { %1178 = vmatmul.mubr.bf16.vlgmr.msra.gmra.mrb[0].mxu0 %v737_v53  ;;  %1186 = vmatmul.mubr.bf16.vlgmr.msra.gmra.mrb[0].mxu1 %v741_v60  ;;  %v742_v63 = vpack.c.bf16 %v733_v44, %v732_v61 }
 0x1f0   : > { %1181 = vmatprep.mubr.bf16.mxu0 %v738_v52  ;;  %v739_v17 = vpack.c.bf16 %v727_v62, %v726_v54  ;;  %v743_v18 = vpack.c.bf16 %v735_v16, %v734_v0 }
 0x1f1   : > { %1189 = vmatprep.mubr.bf16.mxu1 %v742_v63 }
 0x1f7   : > { %1182 = vmatmul.mubr.bf16.gmra.mrb[4].mxu0 %v739_v17  ;;  %1190 = vmatmul.mubr.bf16.gmra.mrb[4].mxu1 %v743_v18 }
 0x2c2   : > { %v1179_v22 = vpop.f32.mrb[0].mxu0  ;;  %v1187_v25 = vpop.f32.mrb[0].mxu1 }
 0x2c3   : > { %v858_v26 = vadd.f32 %v1179_v22, %v1081_v21  ;;  %v890_v31 = vadd.f32 %v1187_v25, %v1081_v21  ;;  %v849_v5 = vpop.f32.mrb[1].mxu0  ;;  %v881_v32 = vpop.f32.mrb[1].mxu1 }
 0x2c4   : > { %v850_v41 = vadd.f32 %v1081_v21, %v849_v5  ;;  %v882_v42 = vadd.f32 %v1081_v21, %v881_v32  ;;  %v1180_v45 = vpop.f32.mrb[2].mxu0  ;;  %v1188_v46 = vpop.f32.mrb[2].mxu1 }
 0x2c5   : > { %914 = vst [vmem:[%s1936_s11 + $0x10] sm:$0xff] %v858_v26  ;;  %922 = vst [vmem:[%s1936_s11 + $0x50] sm:$0xff] %v890_v31  ;;  %v861_v49 = vadd.f32 %v1180_v45, %v1081_v21  ;;  %v893_v50 = vadd.f32 %v1188_v46, %v1081_v21  ;;  %v852_v55 = vpop.f32.mrb[3].mxu0  ;;  %v884_v56 = vpop.f32.mrb[3].mxu1 }
 0x2c6   : > { %912 = vst [vmem:[%s1936_s11] sm:$0xff] %v850_v41  ;;  %920 = vst [vmem:[%s1936_s11 + $0x40] sm:$0xff] %v882_v42  ;;  %v853_v1 = vadd.f32 %v1081_v21, %v852_v55  ;;  %v885_v2 = vadd.f32 %v1081_v21, %v884_v56 }
 0x2c7   : > { %915 = vst [vmem:[%s1936_s11 + $0x18] sm:$0xff] %v861_v49  ;;  %923 = vst [vmem:[%s1936_s11 + $0x58] sm:$0xff] %v893_v50 }
 0x2c8   : > { %913 = vst [vmem:[%s1936_s11 + $0x8] sm:$0xff] %v853_v1  ;;  %921 = vst [vmem:[%s1936_s11 + $0x48] sm:$0xff] %v885_v2 }
 0x2ca   : > { %v1183_v4 = vpop.f32.mrb[4].mxu0  ;;  %v1191_v6 = vpop.f32.mrb[4].mxu1 }
 0x2cb   : > { %v874_v7 = vadd.f32 %v1183_v4, %v1081_v21  ;;  %v906_v8 = vadd.f32 %v1191_v6, %v1081_v21  ;;  %v865_v9 = vpop.f32.mrb[5].mxu0  ;;  %v897_v10 = vpop.f32.mrb[5].mxu1 }
 0x2cc   : > { %v866_v11 = vadd.f32 %v1081_v21, %v865_v9  ;;  %v898_v3 = vadd.f32 %v1081_v21, %v897_v10  ;;  %v1184_v12 = vpop.f32.mrb[6].mxu0  ;;  %v1192_v13 = vpop.f32.mrb[6].mxu1 }
 0x2cd   : > { %918 = vst [vmem:[%s1936_s11 + $0x30] sm:$0xff] %v874_v7  ;;  %926 = vst [vmem:[%s1936_s11 + $0x70] sm:$0xff] %v906_v8  ;;  %v877_v14 = vadd.f32 %v1184_v12, %v1081_v21  ;;  %v909_v15 = vadd.f32 %v1192_v13, %v1081_v21  ;;  %v868_v23 = vpop.f32.mrb[7].mxu0  ;;  %v900_v33 = vpop.f32.mrb[7].mxu1 }
 0x2ce   : > { %916 = vst [vmem:[%s1936_s11 + $0x20] sm:$0xff] %v866_v11  ;;  %924 = vst [vmem:[%s1936_s11 + $0x60] sm:$0xff] %v898_v3  ;;  %v869_v24 = vadd.f32 %v1081_v21, %v868_v23  ;;  %v901_v34 = vadd.f32 %v1081_v21, %v900_v33 }
 0x2cf   : > { %919 = vst [vmem:[%s1936_s11 + $0x38] sm:$0xff] %v877_v14  ;;  %927 = vst [vmem:[%s1936_s11 + $0x78] sm:$0xff] %v909_v15 }
 0x2d0   : > { %917 = vst [vmem:[%s1936_s11 + $0x28] sm:$0xff] %v869_v24  ;;  %925 = vst [vmem:[%s1936_s11 + $0x68] sm:$0xff] %v901_v34 }
 0x2d1 PF: > { %s2176_s10 = sld [smem:[#allocation16_spill]]  ;;  %s936_s27 = smul.u32 %s1575_s24, %s1579_s25 }
 0x2d2   : > { %s943_s21 = sshll.u32 %s1936_s11, 4  ;;  %s2177_s5 = sld [smem:[#allocation20_spill]]  ;;  %s2064_s21 = int_to_ptr.vmem [resolvable:$true] %s943_s21 }
 0x2d3   : > { %s1096_s12 = sshll.u32 %s936_s27, 11  ;;  %s2073_s3 = scalar_lea.sflag [#allocation6], %s283_s1 }
 0x2d4   : > { %s1465_s6 = scalar_lea.vmem %s2064_s21, 2048  ;;  %s1599_s24 = smov [#allocation10]  }
 0x2d5   : > { %p1466_p13 = scmp.ne.s32.totalorder %s2064_s21, %s1465_s6  ;;  %s1469_s25 = sshll.u32 %s1599_s24, 4  ;;  %s1470_s25 = int_to_ptr.vmem [resolvable:$false] %s1469_s25 }
 0x2d6   : > { %s1471_s8 = scalar_lea.vmem %s1470_s25, 4096  ;;  %p1472_p5 = scmp.lt.s32.totalorder %s2064_s21, %s1470_s25 }
 0x2d7   : > { %p2178_p9 = scmp.ne.s32.totalorder %s2176_s10, 0  ;;  %p1473_p8 = scmp.lt.s32.totalorder %s1471_s8, %s1465_s6 }
 0x2d8   : > { %s2069_s15 = scalar_lea.hbm %s2177_s5, %s1096_s12 }
 0x2d9   : > { %p1467_p11 = pnand %p1466_p13, %p2178_p9  ;;  %p1474_p12 = por %p1473_p8, %p1472_p5 }
 0x2db   : > { %p1468_p0 = pneg %p1467_p11 }
 0x2dd   : > { %p1475_p2 = pnand %p1474_p12, %p1468_p0 }
 0x2df   : > { %1478 = shalt.err (!%p1475_p2)
}
 0x2e0   : > { %s1479_s1 = scalar_lea.hbm %s2069_s15, 2048  ;;  %s1483_s17 = scalar_lea.hbm %s2177_s5, 4096 }
 0x2e1   : > { %p1480_p6 = scmp.ne.s32.totalorder %s2069_s15, %s1479_s1  ;;  %p1484_p4 = scmp.lt.u32.totalorder %s2069_s15, %s2177_s5 }
 0x2e2   : > { %p1485_p3 = scmp.lt.u32.totalorder %s1483_s17, %s1479_s1  ;;  %p1487_p13 = scmp.lt.u32.totalorder %s1479_s1, %s2069_s15 }
 0x2e3   : > { %p1481_p10 = pnand %p1480_p6, %p2178_p9 }
 0x2e4   : > { %p1486_p7 = por %p1485_p3, %p1484_p4 }
 0x2e5   : > { %p1482_p1 = pneg %p1481_p10 }
 0x2e6   : > { %p1488_p11 = por %p1487_p13, %p1486_p7 }
 0x2e8   : > { %p1489_p0 = pnand %p1488_p11, %p1482_p1 }
 0x2ea   : > { %1492 = shalt.err (!%p1489_p0)
}
 0x2eb   : > { %s1600_s12 = smov 128   ;;  %s1601_s29 = smov 8  }
 0x2ec   : > { %1235 = dma.vmem_to_hbm [thread:$0]  (%p2178_p9), %s2064_s21, 2048, %s2069_s15, %s2073_s3, %s1600_s12, %s1600_s12, %s1601_s29  }
 0x2ed PF: > { %s2179_s13 = sld [smem:[#allocation14_spill]]  ;;  %s2180_s6 = sld [smem:[#allocation17_spill]] }
 0x2ee   : > { %p1257_p5 = scmp.ge.s32.totalorder %s1591_s28, 2 }
 0x2f3   : > { %s958_s24 = sand.u32 1, %s2179_s13   ;;  %p2181_p8 = scmp.ne.s32.totalorder %s2180_s6, 0 }
 0x2f4   : > { %s959_s25 = scalar_lea.sflag [#allocation6], %s958_s24 }
 0x2f5   : > { %p1249_p12 = pnand %p1257_p5, %p2181_p8 }
 0x2f7   : > { %1546 = dma.done.wait (!%p1249_p12), %s959_s25, 2048  }
 0x2f8   : > { %1548 = vsyncadd (!%p1249_p12), %s959_s25, 4294965248  ;;  %s22_s28 = sadd.s32 1, %s1591_s28   ;;  %s2182_s25 = sld [smem:[#allocation15_spill]] }
 0x2f9   : > { %p19_p2 = scmp.ge.s32.totalorder %s22_s28, 6   ;;  %s2183_s18 = smov %s1555_s19 }
 0x2fa   : > { %s2184_s19 = smov %s1559_s20  ;;  %s2185_s20 = smov %s1815_s7 }
 0x2fb   : > { %s2186_s21 = smov %s1567_s22  ;;  %s2187_s22 = smov %s1571_s23 }
 0x2fc   : > { %s2188_s23 = smov %s1801_s30  ;;  %s2189_s24 = smov %s1583_s26 }
 0x2fd   : > { %s2190_s26 = smov %s2193_s9  ;;  %s2191_s27 = smov %s2197_s14 }
 0x2fe   :  { %21 = sbr.rel (!%p19_p2) target bundleno = 14 (0xe), region = 105 }
 0x305   :  { %964 = vsyncpa [#allocation5], 1 }
 0x306   :  { %966 = vsyncpa [#allocation5 + $0x1], 1 }
 0x307   :  { %967 = vsyncpa [#allocation8], 1 }
 0x308   :  { %968 = vsyncpa [#allocation6], 1 }
 0x309   :  { %970 = vsyncpa [#allocation6 + $0x1], 1 }

</bundles_post_ra>
